<compile_context>
chip_gen: v7x
topology: tpu7x:2x2x1
jax: 0.10.0
libtpu: 0.0.40
codegen_flags: <defaults>
</compile_context>

<pallas_src>
import numpy as np

import jax
import jax.numpy as jnp
from jax.experimental import pallas as pl
from jax.experimental.pallas import tpu as pltpu

# ----------------------------- configuration ------------------------------
B = 2                 # batch
IN_CH = 3             # in_channels (module default)
IMG = 16              # input spatial size (small)
OUT_DIM = 256         # out_dim (module default)
LEVEL_CHS = (16, 24, 40)   # synthetic pyramid channels (first lite0 stages)
N_LEVELS = len(LEVEL_CHS)
BN_EPS = 1e-5


def _level_geom():
    geoms, c, s = [], IN_CH, IMG
    for cout in LEVEL_CHS:
        geoms.append((c, s, s, cout, s // 2, s // 2))   # (Cin, H, W, Cout, Ho, Wo)
        c, s = cout, s // 2
    return tuple(geoms)


LEVEL_GEOM = _level_geom()

PARAM_ORDER = tuple(
    name for l in range(N_LEVELS)
    for name in (f"sel{l}", f"r{l}", f"cb{l}", f"g{l}")
) + ("pb",)


# ------------------------------ fused kernel ------------------------------
def encoder_kernel(x_ref, *refs):
    """3-level stride-2 conv pyramid + GAP + (Linear+BN folded) + ReLU.

    Activation layout per level: (B*H, W*Cin) rows = (b, h), lanes = (w, ci).
    The conv is   y = relu( sum_kh  Sel_kh @ X @ R_kh  + bias )
    where Sel_kh selects rows h = 2i+kh-1 (zero row when out of bounds) and
    R_kh carries the kw taps, the stride-2 column selection and the
    Cin->Cout contraction.  y has layout (B*Ho, Wo*Cout) == next level input.
    """
    out_ref = refs[-1]
    prm = refs[:-1]

    f32, bf16 = jnp.float32, jnp.bfloat16

    def mm(a, b):   # bf16 x bf16 -> f32 accumulate (native MXU path)
        return jnp.dot(a.astype(bf16), b.astype(bf16),
                       preferred_element_type=f32)

    x = x_ref[...]                                      # (B*H0, W0*C0) f32
    emb = jnp.zeros((B, OUT_DIM), f32)

    for l, (ci, h, w, co, ho, wo) in enumerate(LEVEL_GEOM):
        sel_ref, r_ref, cb_ref, g_ref = prm[4 * l: 4 * l + 4]
        kwc = w * ci                                    # rows per kh block in R
        bho = B * ho

        # row-tap gather for all three kh taps in ONE matmul
        yall = mm(sel_ref[...], x)                      # (3*B*Ho, W*Cin)

        # per tap-row column/channel contraction, accumulated in f32
        acc = (mm(yall[0 * bho:1 * bho], r_ref[0 * kwc:1 * kwc, :])
               + mm(yall[1 * bho:2 * bho], r_ref[1 * kwc:2 * kwc, :])
               + mm(yall[2 * bho:3 * bho], r_ref[2 * kwc:3 * kwc, :])
               + cb_ref[...])                           # (B*Ho, Wo*Cout)
        x = jnp.maximum(acc, 0.0)                       # next level input

        # GAP + proj-slice + BN fold: row-sum over Ho, then one matmul with G_l
        rs = jnp.sum(x.reshape(B, ho, wo * co), axis=1)  # (B, Wo*Cout)
        emb = emb + mm(rs, g_ref[...])                   # (B, OUT_DIM)

    # folded proj bias + BN shift, then ReLU (Dropout is identity in eval)
    out_ref[...] = jnp.maximum(emb + prm[-1][...], 0.0)


# ------------------------------ forward glue ------------------------------
def forward(params, x):
    # NCHW -> per-row NHWC flattening: rows = (b, h), lanes = (w, ci); this is
    # the layout the Sel / R lowering matrices are built for.
    xb, cin, h, w = x.shape
    x2d = jnp.transpose(x, (0, 2, 3, 1)).reshape(xb * h, w * cin)
    args = (x2d,) + tuple(params[k] for k in PARAM_ORDER)
    return pl.pallas_call(
        encoder_kernel,
        out_shape=jax.ShapeDtypeStruct((xb, OUT_DIM), jnp.float32),
        compiler_params=pltpu.CompilerParams(vmem_limit_bytes=16 * 1024 * 1024),
    )(*args)


# --------------------- init-time structured lowering -----------------------
def build_sel(batch, h):
    """0/1 row-tap selector: (3*batch*Ho, batch*H); row (kh,b,i) -> col (b, 2i+kh-1)."""
    ho = h // 2
    s = np.zeros((3 * batch * ho, batch * h), np.float32)
    for kh in range(3):
        for b in range(batch):
            for i in range(ho):
                hh = 2 * i + kh - 1
                if 0 <= hh < h:
                    s[kh * batch * ho + b * ho + i, b * h + hh] = 1.0
    return s


def build_r(wconv, w_in):
    """Stacked per-kh column lowering: (3*W*Cin, Wo*Cout).

    R[kh, (w,ci), (j,co)] = wconv[kh, w-2j+1, ci, co] if 0 <= w-2j+1 < 3 else 0.
    """
    cin, cout = wconv.shape[2], wconv.shape[3]
    wo = w_in // 2
    r = np.zeros((3, w_in * cin, wo * cout), np.float32)
    for kh in range(3):
        for j in range(wo):
            for kw in range(3):
                ww = 2 * j + kw - 1
                if 0 <= ww < w_in:
                    r[kh, ww * cin:(ww + 1) * cin, j * cout:(j + 1) * cout] += \
                        wconv[kh, kw]
    return r.reshape(3 * w_in * cin, wo * cout)


def init_params():
    root = jax.random.PRNGKey(42)
    ctr = [0]

    def nk():
        ctr[0] += 1
        return jax.random.fold_in(root, ctr[0])

    def nrm(shape, scale):
        return np.asarray(scale * jax.random.normal(nk(), shape), np.float32)

    def to_bf16(a):
        return jnp.asarray(a, dtype=jnp.bfloat16)

    raw, p = {}, {}
    total_ch = sum(LEVEL_CHS)

    # synthetic backbone conv stack (conv weights pre-rounded to bf16 so the
    # in-kernel bf16 weight storage is exact w.r.t. the reference check)
    for l, (ci, h, w, co, ho, wo) in enumerate(LEVEL_GEOM):
        wconv = nrm((3, 3, ci, co), 0.2)
        wconv = np.asarray(jnp.asarray(wconv, jnp.bfloat16).astype(jnp.float32))
        bconv = nrm((co,), 0.1)
        raw[f"conv_w{l}"] = wconv
        raw[f"conv_b{l}"] = bconv
        p[f"sel{l}"] = to_bf16(build_sel(B, h))
        p[f"r{l}"] = to_bf16(build_r(wconv, w))
        p[f"cb{l}"] = jnp.asarray(np.tile(bconv, wo)[None, :], jnp.float32)

    # proj Linear + BatchNorm1d (eval, running stats) -> folded into G_l / pb
    wlin = nrm((total_ch, OUT_DIM), 0.1)
    blin = nrm((OUT_DIM,), 0.1)
    gamma = 1.0 + nrm((OUT_DIM,), 0.1)
    beta = nrm((OUT_DIM,), 0.1)
    mean = nrm((OUT_DIM,), 0.1)
    var = 1.0 + np.abs(nrm((OUT_DIM,), 0.1))
    raw.update(proj_w=wlin, proj_b=blin, bn_gamma=gamma, bn_beta=beta,
               bn_mean=mean, bn_var=var)

    scale = gamma / np.sqrt(var + BN_EPS)
    off = 0
    for l, (ci, h, w, co, ho, wo) in enumerate(LEVEL_GEOM):
        block = wlin[off:off + co, :] * scale[None, :] / float(ho * wo)
        p[f"g{l}"] = to_bf16(np.tile(block, (wo, 1)))    # rows (j, co)
        off += co
    p["pb"] = jnp.asarray((blin * scale + (beta - mean * scale))[None, :],
                          jnp.float32)
    return p, raw


# ------------------- pure-JAX reference (for self-check) -------------------
def reference_forward(raw, x):
    h = x
    pooled = []
    for l in range(N_LEVELS):
        h = jax.lax.conv_general_dilated(
            h, jnp.asarray(raw[f"conv_w{l}"]),
            window_strides=(2, 2), padding=((1, 1), (1, 1)),
            dimension_numbers=("NCHW", "HWIO", "NCHW"))
        h = jnp.maximum(
            h + jnp.asarray(raw[f"conv_b{l}"]).reshape(1, -1, 1, 1), 0.0)
        pooled.append(jnp.mean(h, axis=(2, 3)))
    z = jnp.concatenate(pooled, axis=1) @ raw["proj_w"] + raw["proj_b"]
    scale = raw["bn_gamma"] / np.sqrt(raw["bn_var"] + BN_EPS)
    z = z * scale + (raw["bn_beta"] - raw["bn_mean"] * scale)
    return jnp.maximum(z, 0.0)


# ----------------------------------- main ----------------------------------
if __name__ == "__main__":
    params, raw = init_params()

    x = jax.random.normal(jax.random.PRNGKey(0), (B, IN_CH, IMG, IMG),
                          jnp.float32)

    fwd = jax.jit(forward)
    y = jax.block_until_ready(fwd(params, x))

    assert y.shape == (B, OUT_DIM)
    assert bool(jnp.all(jnp.isfinite(y)))

    # end-to-end self-check of the matmul lowering (bf16 weights / bf16 matmul
    # inputs in the kernel vs f32 conv reference -> loose tolerance)
    y_ref = np.asarray(reference_forward(raw, x))
    y_np = np.asarray(y)
    err = float(np.max(np.abs(y_np - y_ref) / (np.abs(y_ref) + 1.0)))
    assert err < 5e-2, f"kernel vs reference mismatch: max scaled err {err}"

    print("KERNEL_OK")
</pallas_src>

<mosaic_0001>
module attributes {stable_mosaic.version = 11 : i64} {
  func.func @encoder_kernel(%arg0: memref<32x48xf32, #tpu.memory_space<vmem>>, %arg1: memref<48x32xbf16, #tpu.memory_space<vmem>>, %arg2: memref<144x128xbf16, #tpu.memory_space<vmem>>, %arg3: memref<1x128xf32, #tpu.memory_space<vmem>>, %arg4: memref<128x256xbf16, #tpu.memory_space<vmem>>, %arg5: memref<24x16xbf16, #tpu.memory_space<vmem>>, %arg6: memref<384x96xbf16, #tpu.memory_space<vmem>>, %arg7: memref<1x96xf32, #tpu.memory_space<vmem>>, %arg8: memref<96x256xbf16, #tpu.memory_space<vmem>>, %arg9: memref<12x8xbf16, #tpu.memory_space<vmem>>, %arg10: memref<288x80xbf16, #tpu.memory_space<vmem>>, %arg11: memref<1x80xf32, #tpu.memory_space<vmem>>, %arg12: memref<80x256xbf16, #tpu.memory_space<vmem>>, %arg13: memref<1x256xf32, #tpu.memory_space<vmem>>, %arg14: memref<2x256xf32, #tpu.memory_space<vmem>>) attributes {dimension_semantics = [], scalar_prefetch = 0 : i64, scratch_operands = 0 : i64, tpu.core_type = #tpu.core_type<tc>} {
    %c0 = arith.constant 0 : index
    %c0_0 = arith.constant 0 : index
    %0 = vector.load %arg0[%c0, %c0_0] : memref<32x48xf32, #tpu.memory_space<vmem>>, vector<32x48xf32>
    %cst = arith.constant 0.000000e+00 : f32
    %1 = vector.broadcast %cst : f32 to vector<2x256xf32>
    %c0_1 = arith.constant 0 : index
    %c0_2 = arith.constant 0 : index
    %2 = vector.load %arg1[%c0_1, %c0_2] : memref<48x32xbf16, #tpu.memory_space<vmem>>, vector<48x32xbf16>
    %3 = arith.truncf %0 : vector<32x48xf32> to vector<32x48xbf16>
    %cst_3 = arith.constant dense<0.000000e+00> : vector<48x48xf32>
    %4 = tpu.matmul %2, %3, %cst_3 {dimension_numbers = #tpu.dot_dimension_numbers<[1], [0], [0], [1], [0, 0, 1, 1], [], []>} : vector<48x32xbf16>, vector<32x48xbf16>, vector<48x48xf32> -> vector<48x48xf32>
    %5 = vector.extract_strided_slice %4 {offsets = [0, 0], sizes = [16, 48], strides = [1, 1]} : vector<48x48xf32> to vector<16x48xf32>
    %c0_4 = arith.constant 0 : index
    %c0_5 = arith.constant 0 : index
    %6 = vector.load %arg2[%c0_4, %c0_5] : memref<144x128xbf16, #tpu.memory_space<vmem>>, vector<48x128xbf16>
    %7 = arith.truncf %5 : vector<16x48xf32> to vector<16x48xbf16>
    %cst_6 = arith.constant dense<0.000000e+00> : vector<16x128xf32>
    %8 = tpu.matmul %7, %6, %cst_6 {dimension_numbers = #tpu.dot_dimension_numbers<[1], [0], [0], [1], [0, 0, 1, 1], [], []>} : vector<16x48xbf16>, vector<48x128xbf16>, vector<16x128xf32> -> vector<16x128xf32>
    %9 = vector.extract_strided_slice %4 {offsets = [16, 0], sizes = [16, 48], strides = [1, 1]} : vector<48x48xf32> to vector<16x48xf32>
    %c48 = arith.constant 48 : index
    %c0_7 = arith.constant 0 : index
    %10 = vector.load %arg2[%c48, %c0_7] : memref<144x128xbf16, #tpu.memory_space<vmem>>, vector<48x128xbf16>
    %11 = arith.truncf %9 : vector<16x48xf32> to vector<16x48xbf16>
    %cst_8 = arith.constant dense<0.000000e+00> : vector<16x128xf32>
    %12 = tpu.matmul %11, %10, %cst_8 {dimension_numbers = #tpu.dot_dimension_numbers<[1], [0], [0], [1], [0, 0, 1, 1], [], []>} : vector<16x48xbf16>, vector<48x128xbf16>, vector<16x128xf32> -> vector<16x128xf32>
    %13 = arith.addf %8, %12 : vector<16x128xf32>
    %14 = vector.extract_strided_slice %4 {offsets = [32, 0], sizes = [16, 48], strides = [1, 1]} : vector<48x48xf32> to vector<16x48xf32>
    %c96 = arith.constant 96 : index
    %c0_9 = arith.constant 0 : index
    %15 = vector.load %arg2[%c96, %c0_9] : memref<144x128xbf16, #tpu.memory_space<vmem>>, vector<48x128xbf16>
    %16 = arith.truncf %14 : vector<16x48xf32> to vector<16x48xbf16>
    %cst_10 = arith.constant dense<0.000000e+00> : vector<16x128xf32>
    %17 = tpu.matmul %16, %15, %cst_10 {dimension_numbers = #tpu.dot_dimension_numbers<[1], [0], [0], [1], [0, 0, 1, 1], [], []>} : vector<16x48xbf16>, vector<48x128xbf16>, vector<16x128xf32> -> vector<16x128xf32>
    %18 = arith.addf %13, %17 : vector<16x128xf32>
    %c0_11 = arith.constant 0 : index
    %c0_12 = arith.constant 0 : index
    %19 = vector.load %arg3[%c0_11, %c0_12] : memref<1x128xf32, #tpu.memory_space<vmem>>, vector<1x128xf32>
    %20 = vector.broadcast %19 : vector<1x128xf32> to vector<16x128xf32>
    %21 = arith.addf %18, %20 : vector<16x128xf32>
    %cst_13 = arith.constant 0.000000e+00 : f32
    %22 = vector.broadcast %cst_13 : f32 to vector<16x128xf32>
    %23 = arith.maximumf %21, %22 : vector<16x128xf32>
    %24 = vector.shape_cast %23 : vector<16x128xf32> to vector<2x8x128xf32>
    %cst_14 = arith.constant dense<0.000000e+00> : vector<2x128xf32>
    %25 = vector.multi_reduction <add>, %24, %cst_14 [1] : vector<2x8x128xf32> to vector<2x128xf32>
    %c0_15 = arith.constant 0 : index
    %c0_16 = arith.constant 0 : index
    %26 = vector.load %arg4[%c0_15, %c0_16] : memref<128x256xbf16, #tpu.memory_space<vmem>>, vector<128x256xbf16>
    %27 = arith.truncf %25 : vector<2x128xf32> to vector<2x128xbf16>
    %cst_17 = arith.constant dense<0.000000e+00> : vector<2x256xf32>
    %28 = tpu.matmul %27, %26, %cst_17 {dimension_numbers = #tpu.dot_dimension_numbers<[1], [0], [0], [1], [0, 0, 1, 1], [], []>} : vector<2x128xbf16>, vector<128x256xbf16>, vector<2x256xf32> -> vector<2x256xf32>
    %29 = arith.addf %1, %28 : vector<2x256xf32>
    %c0_18 = arith.constant 0 : index
    %c0_19 = arith.constant 0 : index
    %30 = vector.load %arg5[%c0_18, %c0_19] : memref<24x16xbf16, #tpu.memory_space<vmem>>, vector<24x16xbf16>
    %31 = arith.truncf %23 : vector<16x128xf32> to vector<16x128xbf16>
    %cst_20 = arith.constant dense<0.000000e+00> : vector<24x128xf32>
    %32 = tpu.matmul %30, %31, %cst_20 {dimension_numbers = #tpu.dot_dimension_numbers<[1], [0], [0], [1], [0, 0, 1, 1], [], []>} : vector<24x16xbf16>, vector<16x128xbf16>, vector<24x128xf32> -> vector<24x128xf32>
    %33 = vector.extract_strided_slice %32 {offsets = [0, 0], sizes = [8, 128], strides = [1, 1]} : vector<24x128xf32> to vector<8x128xf32>
    %c0_21 = arith.constant 0 : index
    %c0_22 = arith.constant 0 : index
    %34 = vector.load %arg6[%c0_21, %c0_22] : memref<384x96xbf16, #tpu.memory_space<vmem>>, vector<128x96xbf16>
    %35 = arith.truncf %33 : vector<8x128xf32> to vector<8x128xbf16>
    %cst_23 = arith.constant dense<0.000000e+00> : vector<8x96xf32>
    %36 = tpu.matmul %35, %34, %cst_23 {dimension_numbers = #tpu.dot_dimension_numbers<[1], [0], [0], [1], [0, 0, 1, 1], [], []>} : vector<8x128xbf16>, vector<128x96xbf16>, vector<8x96xf32> -> vector<8x96xf32>
    %37 = vector.extract_strided_slice %32 {offsets = [8, 0], sizes = [8, 128], strides = [1, 1]} : vector<24x128xf32> to vector<8x128xf32>
    %c128 = arith.constant 128 : index
    %c0_24 = arith.constant 0 : index
    %38 = vector.load %arg6[%c128, %c0_24] : memref<384x96xbf16, #tpu.memory_space<vmem>>, vector<128x96xbf16>
    %39 = arith.truncf %37 : vector<8x128xf32> to vector<8x128xbf16>
    %cst_25 = arith.constant dense<0.000000e+00> : vector<8x96xf32>
    %40 = tpu.matmul %39, %38, %cst_25 {dimension_numbers = #tpu.dot_dimension_numbers<[1], [0], [0], [1], [0, 0, 1, 1], [], []>} : vector<8x128xbf16>, vector<128x96xbf16>, vector<8x96xf32> -> vector<8x96xf32>
    %41 = arith.addf %36, %40 : vector<8x96xf32>
    %42 = vector.extract_strided_slice %32 {offsets = [16, 0], sizes = [8, 128], strides = [1, 1]} : vector<24x128xf32> to vector<8x128xf32>
    %c256 = arith.constant 256 : index
    %c0_26 = arith.constant 0 : index
    %43 = vector.load %arg6[%c256, %c0_26] : memref<384x96xbf16, #tpu.memory_space<vmem>>, vector<128x96xbf16>
    %44 = arith.truncf %42 : vector<8x128xf32> to vector<8x128xbf16>
    %cst_27 = arith.constant dense<0.000000e+00> : vector<8x96xf32>
    %45 = tpu.matmul %44, %43, %cst_27 {dimension_numbers = #tpu.dot_dimension_numbers<[1], [0], [0], [1], [0, 0, 1, 1], [], []>} : vector<8x128xbf16>, vector<128x96xbf16>, vector<8x96xf32> -> vector<8x96xf32>
    %46 = arith.addf %41, %45 : vector<8x96xf32>
    %c0_28 = arith.constant 0 : index
    %c0_29 = arith.constant 0 : index
    %47 = vector.load %arg7[%c0_28, %c0_29] : memref<1x96xf32, #tpu.memory_space<vmem>>, vector<1x96xf32>
    %48 = vector.broadcast %47 : vector<1x96xf32> to vector<8x96xf32>
    %49 = arith.addf %46, %48 : vector<8x96xf32>
    %cst_30 = arith.constant 0.000000e+00 : f32
    %50 = vector.broadcast %cst_30 : f32 to vector<8x96xf32>
    %51 = arith.maximumf %49, %50 : vector<8x96xf32>
    %52 = vector.shape_cast %51 : vector<8x96xf32> to vector<2x4x96xf32>
    %cst_31 = arith.constant dense<0.000000e+00> : vector<2x96xf32>
    %53 = vector.multi_reduction <add>, %52, %cst_31 [1] : vector<2x4x96xf32> to vector<2x96xf32>
    %c0_32 = arith.constant 0 : index
    %c0_33 = arith.constant 0 : index
    %54 = vector.load %arg8[%c0_32, %c0_33] : memref<96x256xbf16, #tpu.memory_space<vmem>>, vector<96x256xbf16>
    %55 = arith.truncf %53 : vector<2x96xf32> to vector<2x96xbf16>
    %cst_34 = arith.constant dense<0.000000e+00> : vector<2x256xf32>
    %56 = tpu.matmul %55, %54, %cst_34 {dimension_numbers = #tpu.dot_dimension_numbers<[1], [0], [0], [1], [0, 0, 1, 1], [], []>} : vector<2x96xbf16>, vector<96x256xbf16>, vector<2x256xf32> -> vector<2x256xf32>
    %57 = arith.addf %29, %56 : vector<2x256xf32>
    %c0_35 = arith.constant 0 : index
    %c0_36 = arith.constant 0 : index
    %58 = vector.load %arg9[%c0_35, %c0_36] : memref<12x8xbf16, #tpu.memory_space<vmem>>, vector<12x8xbf16>
    %59 = arith.truncf %51 : vector<8x96xf32> to vector<8x96xbf16>
    %cst_37 = arith.constant dense<0.000000e+00> : vector<12x96xf32>
    %60 = tpu.matmul %58, %59, %cst_37 {dimension_numbers = #tpu.dot_dimension_numbers<[1], [0], [0], [1], [0, 0, 1, 1], [], []>} : vector<12x8xbf16>, vector<8x96xbf16>, vector<12x96xf32> -> vector<12x96xf32>
    %61 = vector.extract_strided_slice %60 {offsets = [0, 0], sizes = [4, 96], strides = [1, 1]} : vector<12x96xf32> to vector<4x96xf32>
    %c0_38 = arith.constant 0 : index
    %c0_39 = arith.constant 0 : index
    %62 = vector.load %arg10[%c0_38, %c0_39] : memref<288x80xbf16, #tpu.memory_space<vmem>>, vector<96x80xbf16>
    %63 = arith.truncf %61 : vector<4x96xf32> to vector<4x96xbf16>
    %cst_40 = arith.constant dense<0.000000e+00> : vector<4x80xf32>
    %64 = tpu.matmul %63, %62, %cst_40 {dimension_numbers = #tpu.dot_dimension_numbers<[1], [0], [0], [1], [0, 0, 1, 1], [], []>} : vector<4x96xbf16>, vector<96x80xbf16>, vector<4x80xf32> -> vector<4x80xf32>
    %65 = vector.extract_strided_slice %60 {offsets = [4, 0], sizes = [4, 96], strides = [1, 1]} : vector<12x96xf32> to vector<4x96xf32>
    %c96_41 = arith.constant 96 : index
    %c0_42 = arith.constant 0 : index
    %66 = vector.load %arg10[%c96_41, %c0_42] : memref<288x80xbf16, #tpu.memory_space<vmem>>, vector<96x80xbf16>
    %67 = arith.truncf %65 : vector<4x96xf32> to vector<4x96xbf16>
    %cst_43 = arith.constant dense<0.000000e+00> : vector<4x80xf32>
    %68 = tpu.matmul %67, %66, %cst_43 {dimension_numbers = #tpu.dot_dimension_numbers<[1], [0], [0], [1], [0, 0, 1, 1], [], []>} : vector<4x96xbf16>, vector<96x80xbf16>, vector<4x80xf32> -> vector<4x80xf32>
    %69 = arith.addf %64, %68 : vector<4x80xf32>
    %70 = vector.extract_strided_slice %60 {offsets = [8, 0], sizes = [4, 96], strides = [1, 1]} : vector<12x96xf32> to vector<4x96xf32>
    %c192 = arith.constant 192 : index
    %c0_44 = arith.constant 0 : index
    %71 = vector.load %arg10[%c192, %c0_44] : memref<288x80xbf16, #tpu.memory_space<vmem>>, vector<96x80xbf16>
    %72 = arith.truncf %70 : vector<4x96xf32> to vector<4x96xbf16>
    %cst_45 = arith.constant dense<0.000000e+00> : vector<4x80xf32>
    %73 = tpu.matmul %72, %71, %cst_45 {dimension_numbers = #tpu.dot_dimension_numbers<[1], [0], [0], [1], [0, 0, 1, 1], [], []>} : vector<4x96xbf16>, vector<96x80xbf16>, vector<4x80xf32> -> vector<4x80xf32>
    %74 = arith.addf %69, %73 : vector<4x80xf32>
    %c0_46 = arith.constant 0 : index
    %c0_47 = arith.constant 0 : index
    %75 = vector.load %arg11[%c0_46, %c0_47] : memref<1x80xf32, #tpu.memory_space<vmem>>, vector<1x80xf32>
    %76 = vector.broadcast %75 : vector<1x80xf32> to vector<4x80xf32>
    %77 = arith.addf %74, %76 : vector<4x80xf32>
    %cst_48 = arith.constant 0.000000e+00 : f32
    %78 = vector.broadcast %cst_48 : f32 to vector<4x80xf32>
    %79 = arith.maximumf %77, %78 : vector<4x80xf32>
    %80 = vector.shape_cast %79 : vector<4x80xf32> to vector<2x2x80xf32>
    %cst_49 = arith.constant dense<0.000000e+00> : vector<2x80xf32>
    %81 = vector.multi_reduction <add>, %80, %cst_49 [1] : vector<2x2x80xf32> to vector<2x80xf32>
    %c0_50 = arith.constant 0 : index
    %c0_51 = arith.constant 0 : index
    %82 = vector.load %arg12[%c0_50, %c0_51] : memref<80x256xbf16, #tpu.memory_space<vmem>>, vector<80x256xbf16>
    %83 = arith.truncf %81 : vector<2x80xf32> to vector<2x80xbf16>
    %cst_52 = arith.constant dense<0.000000e+00> : vector<2x256xf32>
    %84 = tpu.matmul %83, %82, %cst_52 {dimension_numbers = #tpu.dot_dimension_numbers<[1], [0], [0], [1], [0, 0, 1, 1], [], []>} : vector<2x80xbf16>, vector<80x256xbf16>, vector<2x256xf32> -> vector<2x256xf32>
    %85 = arith.addf %57, %84 : vector<2x256xf32>
    %c0_53 = arith.constant 0 : index
    %c0_54 = arith.constant 0 : index
    %86 = vector.load %arg13[%c0_53, %c0_54] : memref<1x256xf32, #tpu.memory_space<vmem>>, vector<1x256xf32>
    %87 = vector.broadcast %86 : vector<1x256xf32> to vector<2x256xf32>
    %88 = arith.addf %85, %87 : vector<2x256xf32>
    %cst_55 = arith.constant 0.000000e+00 : f32
    %89 = vector.broadcast %cst_55 : f32 to vector<2x256xf32>
    %90 = arith.maximumf %88, %89 : vector<2x256xf32>
    %c0_56 = arith.constant 0 : index
    %c0_57 = arith.constant 0 : index
    %91 = vector.load %arg14[%c0_56, %c0_57] : memref<2x256xf32, #tpu.memory_space<vmem>>, vector<2x256xf32>
    tpu.vector_store %arg14[%c0_56, %c0_57], %90 {strides = array<i32>} : memref<2x256xf32, #tpu.memory_space<vmem>>, vector<2x256xf32>,
    return
  }
}

</mosaic_0001>

<bundles_post_ra>
// kernel: forward.1
= control target key start
LH: loop header
LB: loop body
LE: loop exit
PB: predicated region body
PF: predicated region fallthrough
CT: control target
= control target key end

     0   :  { %v2077_v3 = vmov 0.0   ;;  %vm2078_vm0 = vmmov 0   ;;  %vm76_vm1 = vcmask 261120   ;;  %s2583_s0 = inlined_call_operand.vmem [shape: f32[32,48], index: 0, kind: input, shape index: {}]   ;;  %s2584_s1 = inlined_call_operand.vmem [shape: bf16[48,32], index: 1, kind: input, shape index: {}]   ;;  %s2585_s2 = inlined_call_operand.vmem [shape: bf16[144,128], index: 2, kind: input, shape index: {}]   ;;  %s2586_s3 = inlined_call_operand.vmem [shape: f32[1,128], index: 3, kind: input, shape index: {}]   ;;  %s2587_s4 = inlined_call_operand.vmem [shape: bf16[128,256], index: 4, kind: input, shape index: {}]   ;;  %s2588_s5 = inlined_call_operand.vmem [shape: bf16[24,16], index: 5, kind: input, shape index: {}]   ;;  %s2589_s6 = inlined_call_operand.vmem [shape: bf16[384,96], index: 6, kind: input, shape index: {}]   ;;  %s2590_s7 = inlined_call_operand.vmem [shape: f32[1,96], index: 7, kind: input, shape index: {}]   ;;  %s2591_s8 = inlined_call_operand.vmem [shape: bf16[96,256], index: 8, kind: input, shape index: {}]   ;;  %s2592_s9 = inlined_call_operand.vmem [shape: bf16[12,8], index: 9, kind: input, shape index: {}]   ;;  %s2593_s10 = inlined_call_operand.vmem [shape: bf16[288,80], index: 10, kind: input, shape index: {}]   ;;  %s2594_s11 = inlined_call_operand.vmem [shape: f32[1,80], index: 11, kind: input, shape index: {}]   ;;  %s2595_s12 = inlined_call_operand.vmem [shape: bf16[80,256], index: 12, kind: input, shape index: {}]   ;;  %s2596_s13 = inlined_call_operand.vmem [shape: f32[1,256], index: 13, kind: input, shape index: {}]   ;;  %s2597_s14 = inlined_call_operand.hbm [shape: f32[2,256], index: 14, kind: output, shape index: {}]  }
   0x1   :  { %v49_v0 = vld [vmem:[%s2583_s0] sm:$0xff]  ;;  %v50_v1 = vld [vmem:[%s2583_s0 + $0x8] sm:$0xff]  ;;  %v51_v2 = vld [vmem:[%s2583_s0 + $0x10] sm:$0xff]  ;;  %1768 = vmatprep.subr.bf16.mxu0 %v2077_v3  ;;  %1772 = vmatprep.mubr.msk.bf16.mxu0 %vm2078_vm0, %v2077_v3 }
   0x2   :  { %v59_v4 = vpack.c.bf16 %v50_v1, %v49_v0  ;;  %v52_v5 = vld [vmem:[%s2583_s0 + $0x18] sm:$0xff]  ;;  %1784 = vmatprep.subr.bf16.mxu1 %v2077_v3  ;;  %1790 = vmatprep.mubr.msk.bf16.mxu1 %vm2078_vm0, %v2077_v3  ;;  %v1939_v7 = vld [vmem:[%s2584_s1] sm:$0xff]   ;;  %v1940_v8 = vld [vmem:[%s2584_s1 + $0x8] sm:$0xff]  }
   0x3   :  { %v60_v6 = vpack.c.bf16 %v52_v5, %v51_v2  ;;  %v1941_v9 = vld [vmem:[%s2584_s1 + $0x10] sm:$0xff]  }
   0x4   :  { %1769 = vmatpush3.bf16.msra.mxu0 %v59_v4 }
   0x5   :  { %1770 = vmatprep.subr.bf16.mxu0 %v2077_v3 }
   0x8   :  { %1771 = vmatpush3.bf16.msra.mxu0 %v60_v6 }
   0x9   :  { %1804 = vmatprep.subr.bf16.mxu0 %v2077_v3 }
   0xb   :  { %1773 = vmatmul.mubr.msk.bf16.vlgmr.msra.gmra.mrb[0].mxu0 %vm76_vm1, %v1939_v7 }
   0xc   :  { %1776 = vmatprep.mubr.msk.bf16.mxu0 %vm2078_vm0, %v2077_v3 }
  0x13   :  { %1777 = vmatmul.mubr.msk.bf16.gmra.mrb[4].mxu0 %vm76_vm1, %v1940_v8 }
  0x14   :  { %1780 = vmatprep.mubr.msk.bf16.mxu0 %vm2078_vm0, %v2077_v3 }
  0x1b   :  { %1781 = vmatmul.mubr.msk.bf16.gmra.mrb[8].mxu0 %vm76_vm1, %v1941_v9 }
  0x1c   :  { %1810 = vmatprep.mubr.msk.bf16.mxu0 %vm2078_vm0, %v2077_v3 }
  0x1d   :  { %19 = vsyncpa [#allocation3], 0  ;;  %v1942_v10 = vld [vmem:[%s2585_s2 + $0x18] sm:$0xff]   ;;  %v1943_v11 = vld [vmem:[%s2585_s2 + $0x20] sm:$0xff]   ;;  %vm175_vm2 = vcmask 392192   ;;  %vm406_vm3 = vcmask 130048  }
  0x1e   :  { %1785 = vmatpush3.bf16.msra.mxu1 %v1942_v10  ;;  %v1944_v12 = vld [vmem:[%s2585_s2 + $0x30] sm:$0xff]   ;;  %v1945_v13 = vld [vmem:[%s2585_s2 + $0x28] sm:$0xff]   ;;  %v1947_v14 = vld [vmem:[%s2585_s2 + $0x38] sm:$0xff]   ;;  %vm822_vm4 = vcmask 1041409   ;;  %vm789_vm5 = vcmask 781312   ;;  %vm1070_vm6 = vcmask 1043456  }
  0x1f   :  { %1786 = vmatprep.subr.bf16.mxu1 %v2077_v3  ;;  %1805 = vmatpush3.bf16.msra.mxu0 %v1944_v12  ;;  %v1949_v15 = vld [vmem:[%s2585_s2 + $0x40] sm:$0xff]   ;;  %v1948_v27 = vld [vmem:[%s2585_s2 + $0x8] sm:$0xff]   ;;  %v1950_v31 = vld [vmem:[%s2585_s2 + $0x10] sm:$0xff]   ;;  %vm1066_vm7 = vcmask 64512   ;;  %vm885_vm8 = vcmask 785408   ;;  %vm1413_vm9 = vcmask 648192  }
  0x20   :  { %1806 = vmatprep.subr.bf16.mxu0 %v2077_v3  ;;  %v1946_v24 = vld [vmem:[%s2585_s2] sm:$0xff]   ;;  %v1955_v36 = vld [vmem:[%s2589_s6 + $0x8] sm:$0xff]   ;;  %v1957_v37 = vld [vmem:[%s2589_s6 + $0x10] sm:$0xff]   ;;  %vm1496_vm10 = vcmask 654336   ;;  %s2081_s30 = smov [#allocation2]  }
  0x21   :  { %v1951_v34 = vld [vmem:[%s2588_s5] sm:$0xff]   ;;  %v1959_v38 = vld [vmem:[%s2589_s6 + $0x18] sm:$0xff]   ;;  %v1963_v40 = vld [vmem:[%s2589_s6 + $0x28] sm:$0xff]   ;;  %s1577_s15 = sshll.u32 %s2081_s30, 4  ;;  %s1578_s15 = int_to_ptr.vmem [resolvable:$true] %s1577_s15 }
  0x22   :  { %1787 = vmatpush3.bf16.msra.mxu1 %v1943_v11  ;;  %v1953_v35 = vld [vmem:[%s2589_s6] sm:$0xff]   ;;  %v1965_v41 = vld [vmem:[%s2589_s6 + $0x30] sm:$0xff]   ;;  %v1952_v6 = vld [vmem:[%s2588_s5 + $0x8] ss:$0 sps:$4 sm:$0xff]   ;;  %p2058_p1 = scmp.lt.s32.totalorder %s1578_s15, %s1578_s15 }
  0x23   :  { %1788 = vmatprep.subr.bf16.mxu1 %v2077_v3  ;;  %1807 = vmatpush3.bf16.msra.mxu0 %v1947_v14  ;;  %v1961_v39 = vld [vmem:[%s2589_s6 + $0x20] sm:$0xff]   ;;  %v1956_v12 = vld [vmem:[%s2589_s6 + $0x48] sm:$0xff]  }
  0x24   :  { %1808 = vmatprep.subr.bf16.mxu0 %v2077_v3  ;;  %v1603_v53 = vld [vmem:[%s2586_s3] ss:$0 sm:$0xff] }
  0x25   :  { %v1954_v7 = vld [vmem:[%s2589_s6 + $0x40] sm:$0xff]  }
  0x26   :  { %1789 = vmatpush3.bf16.msra.mxu1 %v1945_v13 }
  0x27   :  { %1794 = vmatprep.subr.bf16.mxu1 %v2077_v3  ;;  %1809 = vmatpush3.bf16.msra.mxu0 %v1949_v15 }
  0xde   :  { %v120_v16 = vpop.f32.mrb[0].mxu0 }
  0xdf   :  { %v1774_v17 = vpop.f32.mrb[1].mxu0 }
  0xe0   :  { %v123_v18 = vpop.f32.mrb[2].mxu0  ;;  %v1958_v17 = vld [vmem:[%s2589_s6 + $0x50] sm:$0xff]  }
  0xe1   :  { %v149_v19 = vpack.c.bf16 %v123_v18, %v120_v16  ;;  %v1775_v20 = vpop.f32.mrb[3].mxu0 }
  0xe6   :  { %v128_v21 = vpop.f32.mrb[4].mxu0 }
  0xe7   :  { %v1778_v22 = vpop.f32.mrb[5].mxu0 }
  0xe8   :  { %v131_v23 = vpop.f32.mrb[6].mxu0 }
  0xe9   :  { %v156_v25 = vpack.c.bf16 %v131_v23, %v128_v21  ;;  %v1779_v26 = vpop.f32.mrb[7].mxu0  ;;  %v1960_v21 = vld [vmem:[%s2589_s6 + $0x58] sm:$0xff]   ;;  %v1962_v23 = vld [vmem:[%s2589_s6 + $0x60] sm:$0xff]  }
  0xea   :  { %v1967_v26 = vld [vmem:[%s2589_s6 + $0x38] sm:$0xff]  }
  0xeb   :  { %1791 = vmatmul.mubr.msk.bf16.vlgmr.msra.gmra.mrb[0].mxu1 %vm175_vm2, %v156_v25  ;;  %v1966_v25 = vld [vmem:[%s2589_s6 + $0x70] sm:$0xff]  }
  0xec   :  { %1795 = vmatpush3.bf16.msra.mxu1 %v1946_v24  ;;  %1800 = vmatprep.mubr.msk.bf16.mxu1 %vm2078_vm0, %v2077_v3  ;;  %v1964_v24 = vld [vmem:[%s2589_s6 + $0x68] sm:$0xff]  }
  0xed   :  { %1796 = vmatprep.subr.bf16.mxu1 %v2077_v3 }
  0xee   :  { %v136_v28 = vpop.f32.mrb[8].mxu0 }
  0xef   :  { %v1782_v29 = vpop.f32.mrb[9].mxu0 }
  0xf0   :  { %1797 = vmatpush3.bf16.msra.mxu1 %v1948_v27  ;;  %v139_v30 = vpop.f32.mrb[10].mxu0  ;;  %v1968_v27 = vld [vmem:[%s2589_s6 + $0x78] sm:$0xff]  }
  0xf1   :  { %v288_v32 = vpack.c.bf16 %v139_v30, %v136_v28  ;;  %1798 = vmatprep.subr.bf16.mxu1 %v2077_v3  ;;  %v1783_v33 = vpop.f32.mrb[11].mxu0 }
  0xf2   :  { %v1969_v33 = vld [vmem:[%s2589_s6 + $0x80] sm:$0xff]  }
  0xf3   :  { %1811 = vmatmul.mubr.msk.bf16.vlgmr.msra.gmra.mrb[12].mxu0 %vm175_vm2, %v288_v32 }
  0xf4   :  { %1799 = vmatpush3.bf16.msra.mxu1 %v1950_v31  ;;  %1816 = vmatprep.mubr.msk.bf16.mxu0 %vm406_vm3, %v1951_v34 }
  0xf5   :  { %1840 = vmatprep.subr.bf16.mxu1 %v2077_v3 }
  0xf7   :  { %1801 = vmatmul.mubr.msk.bf16.vlgmr.msra.gmra.mrb[4].mxu1 %vm175_vm2, %v149_v19 }
  0xf8   :  { %1856 = vmatprep.mubr.msk.bf16.mxu1 %vm2078_vm0, %v2077_v3  ;;  %1841 = vmatpush3.bf16.msra.mxu1 %v1953_v35  ;;  %v1970_v35 = vld [vmem:[%s2589_s6 + $0x88] sm:$0xff]  }
  0xf9   :  { %1842 = vmatprep.subr.bf16.mxu1 %v2077_v3 }
  0xfc   :  { %1843 = vmatpush3.bf16.msra.mxu1 %v1955_v36  ;;  %v1971_v36 = vld [vmem:[%s2589_s6 + $0x90] sm:$0xff]  }
  0xfd   :  { %1844 = vmatprep.subr.bf16.mxu1 %v2077_v3 }
 0x100   :  { %1845 = vmatpush3.bf16.msra.mxu1 %v1957_v37  ;;  %v1972_v37 = vld [vmem:[%s2589_s6 + $0x98] sm:$0xff]  }
 0x101   :  { %1846 = vmatprep.subr.bf16.mxu1 %v2077_v3 }
 0x104   :  { %1847 = vmatpush3.bf16.msra.mxu1 %v1959_v38  ;;  %v1973_v38 = vld [vmem:[%s2589_s6 + $0xa0] sm:$0xff]  }
 0x105   :  { %1848 = vmatprep.subr.bf16.mxu1 %v2077_v3 }
 0x108   :  { %1849 = vmatpush3.bf16.msra.mxu1 %v1961_v39  ;;  %v1974_v39 = vld [vmem:[%s2589_s6 + $0xa8] sm:$0xff]  }
 0x109   :  { %1850 = vmatprep.subr.bf16.mxu1 %v2077_v3 }
 0x10c   :  { %1851 = vmatpush3.bf16.msra.mxu1 %v1963_v40  ;;  %v1975_v40 = vld [vmem:[%s2589_s6 + $0xb0] sm:$0xff]  }
 0x10d   :  { %1852 = vmatprep.subr.bf16.mxu1 %v2077_v3 }
 0x110   :  { %1853 = vmatpush3.bf16.msra.mxu1 %v1965_v41  ;;  %v1976_v41 = vld [vmem:[%s2589_s6 + $0xb8] sm:$0xff]  }
 0x111   :  { %1854 = vmatprep.subr.bf16.mxu1 %v2077_v3 }
 0x114   :  { %1855 = vmatpush3.bf16.msra.mxu1 %v1967_v26  ;;  %v2022_v26 = vld [vmem:[%s2593_s10 + $0x38] sm:$0xff]  }
 0x1be   :  { %v213_v42 = vpop.f32.mrb[0].mxu1 }
 0x1bf   :  { %v1792_v43 = vpop.f32.mrb[1].mxu1 }
 0x1c0   :  { %v216_v44 = vpop.f32.mrb[2].mxu1  ;;  %v1979_v43 = vld [vmem:[%s2591_s8 + $0x4] ss:$8 sps:$4 sm:$0xff]  }
 0x1c1   :  { %v1793_v45 = vpop.f32.mrb[3].mxu1  ;;  %889 = vmatprep.subr.bf16.mxu1 %v1979_v43  ;;  %v1999_v43 = vld [vmem:[%s2587_s4 + $0x10] ss:$8 sps:$4 sm:$0xff]  }
 0x1c2   :  { %v1982_v45 = vld [vmem:[%s2591_s8 + $0x14] ss:$8 sps:$4 sm:$0xff]  }
 0x1c6   :  { %v344_v46 = vpop.f32.mrb[12].mxu0 }
 0x1c7   :  { %v1812_v47 = vpop.f32.mrb[13].mxu0 }
 0x1c8   :  { %v347_v48 = vpop.f32.mrb[14].mxu0  ;;  %v1985_v47 = vld [vmem:[%s2591_s8 + $0x24] ss:$8 sps:$4 sm:$0xff]  }
 0x1c9   :  { %v1813_v49 = vpop.f32.mrb[15].mxu0 }
 0x1ca   :  { %v275_v50 = vpop.f32.mrb[4].mxu1  ;;  %v1989_v49 = vld [vmem:[%s2591_s8 + $0x34] ss:$8 sps:$4 sm:$0xff]  }
 0x1cb   :  { %v276_v51 = vadd.f32 %v275_v50, %v213_v42  ;;  %v1802_v52 = vpop.f32.mrb[5].mxu1  ;;  %v1987_v50 = vld [vmem:[%s2591_s8 + $0x30] ss:$8 sps:$4 sm:$0xff]  }
 0x1cc   :  { %v278_v54 = vpop.f32.mrb[6].mxu1  ;;  %v1990_v52 = vld [vmem:[%s2591_s8 + $0x40] ss:$8 sps:$4 sm:$0xff]  }
 0x1cd   :  { %v351_v55 = vadd.f32 %v344_v46, %v276_v51  ;;  %v279_v56 = vadd.f32 %v278_v54, %v216_v44  ;;  %v1803_v57 = vpop.f32.mrb[7].mxu1  ;;  %v1977_v44 = vld [vmem:[%s2591_s8] ss:$8 sps:$4 sm:$0xff]   ;;  %v1980_v46 = vld [vmem:[%s2591_s8 + $0x10] ss:$8 sps:$4 sm:$0xff]  }
 0x1ce   :  { %v1992_v51 = vld [vmem:[%s2591_s8 + $0x44] ss:$8 sps:$4 sm:$0xff]   ;;  %v1993_v54 = vld [vmem:[%s2591_s8 + $0x50] ss:$8 sps:$4 sm:$0xff]  }
 0x1cf   :  { %v360_v58 = vadd.f32 %v1603_v53, %v351_v55  ;;  %v352_v59 = vadd.f32 %v347_v48, %v279_v56  ;;  %v1983_v48 = vld [vmem:[%s2591_s8 + $0x20] ss:$8 sps:$4 sm:$0xff]   ;;  %v1998_v55 = vld [vmem:[%s2587_s4 + $0x4] ss:$8 sps:$4 sm:$0xff]   ;;  %v2079_v56 = vmov 0  }
 0x1d1   :  { %v362_v60 = vmax.f32 %v360_v58, 0.0  ;;  %v361_v61 = vadd.f32 %v1603_v53, %v352_v59  ;;  %v1995_v53 = vld [vmem:[%s2591_s8 + $0x54] ss:$8 sps:$4 sm:$0xff]  }
 0x1d3   :  { %v364_v62 = vrot.slane %v362_v60, 4  ;;  %v363_v63 = vmax.f32 %v361_v61, 0.0 }
 0x1d5   :  { %v365_v0 = vadd.f32 %v364_v62, %v362_v60  ;;  %v370_v1 = vrot.slane %v363_v63, 4  ;;  %v397_v2 = vpack.c.bf16 %v363_v63, %v362_v60 }
 0x1d7   :  { %v366_v4 = vrot.slane %v365_v0, 2  ;;  %v371_v5 = vadd.f32 %v370_v1, %v363_v63  ;;  %1814 = vmatprep.subr.bf16.mxu0 %v397_v2 }
 0x1d8   :  { %1815 = vmatpush3.bf16.msra.mxu0 %v397_v2 }
 0x1d9   :  { %v367_v8 = vadd.f32 %v366_v4, %v365_v0  ;;  %v372_v9 = vrot.slane %v371_v5, 2  ;;  %1820 = vmatprep.subr.bf16.mxu0 %v2077_v3  ;;  %v1632_v4 = vld [vmem:[%s2590_s7] ss:$0 sm:$0xff] }
 0x1db   :  { %v368_v10 = vrot.slane %v367_v8, 1  ;;  %v373_v11 = vadd.f32 %v372_v9, %v371_v5  ;;  %1817 = vmatmul.mubr.msk.bf16.vlgmr.msra.gmra.mrb[16].mxu0 %vm406_vm3, %v1952_v6 }
 0x1dc   :  { %1821 = vmatpush3.bf16.msra.mxu0 %v1954_v7  ;;  %1836 = vmatprep.mubr.msk.bf16.mxu0 %vm2078_vm0, %v2077_v3 }
 0x1dd   :  { %v374_v13 = vrot.slane %v373_v11, 1  ;;  %1822 = vmatprep.subr.bf16.mxu0 %v2077_v3  ;;  %v369_v14 = vadd.f32 %v368_v10, %v367_v8 }
 0x1df   :  { %v375_v15 = vadd.f32 %v374_v13, %v373_v11  ;;  %v392_v16 = vpack.c.bf16 %v369_v14, %v369_v14 }
 0x1e0   :  { %1823 = vmatpush3.bf16.msra.mxu0 %v1956_v12 }
 0x1e1   :  { %1824 = vmatprep.subr.bf16.mxu0 %v2077_v3  ;;  %v393_v18 = vpack.c.bf16 %v375_v15, %v375_v15  ;;  %v932_v19 = vunpack.c.l.b16 %v392_v16 }
 0x1e3   :  { %v933_v20 = vunpack.c.l.b16 %v393_v18 }
 0x1e4   :  { %1825 = vmatpush3.bf16.msra.mxu0 %v1958_v17  ;;  %v1986_v17 = vld [vmem:[%s2592_s9] sm:$0x3f]  }
 0x1e5   :  { %1826 = vmatprep.subr.bf16.mxu0 %v2077_v3  ;;  %v2292_v22 = vsel %vm822_vm4, %v933_v20, %v932_v19  ;;  %v2020_v20 = vld [vmem:[%s2593_s10 + $0x30] sm:$0xff]  }
 0x1e8   :  { %1827 = vmatpush3.bf16.msra.mxu0 %v1960_v21 }
 0x1e9   :  { %1828 = vmatprep.subr.bf16.mxu0 %v2077_v3 }
 0x1ec   :  { %1829 = vmatpush3.bf16.msra.mxu0 %v1962_v23 }
 0x1ed   :  { %1830 = vmatprep.subr.bf16.mxu0 %v2077_v3 }
 0x1f0   :  { %1831 = vmatpush3.bf16.msra.mxu0 %v1964_v24 }
 0x1f1   :  { %1832 = vmatprep.subr.bf16.mxu0 %v2077_v3 }
 0x1f4   :  { %1833 = vmatpush3.bf16.msra.mxu0 %v1966_v25 }
 0x1f5   :  { %1834 = vmatprep.subr.bf16.mxu0 %v2077_v3 }
 0x1f8   :  { %1835 = vmatpush3.bf16.msra.mxu0 %v1968_v27 }
 0x1f9   :  { %1860 = vmatprep.subr.bf16.mxu0 %v2077_v3 }
 0x2ae   :  { %v1818_v28 = vpop.f32.mrb[16].mxu0 }
 0x2af   :  { %v447_v29 = vpop.f32.mrb[17].mxu0  ;;  %v687_v42 = vpack.c.bf16 %v1818_v28, %v1818_v28 }
 0x2b0   :  { %v477_v30 = vpack.c.bf16 %v447_v29, %v447_v29  ;;  %v1819_v31 = vpop.f32.mrb[18].mxu0 }
 0x2b1   :  { %v450_v32 = vpop.f32.mrb[19].mxu0  ;;  %v2024_v31 = vld [vmem:[%s2593_s10 + $0x40] sm:$0xff]  }
 0x2b2   :  { %v494_v34 = vpack.c.bf16 %v450_v32, %v450_v32  ;;  %1857 = vmatmul.mubr.bf16.vlgmr.msra.gmra.mrb[8].mxu1 %v477_v30 }
 0x2b3   :  { %890 = vmatpush1.bf16.msra.mxu1 %v1977_v44  ;;  %921 = vmatprep.mubr.bf16.mxu1 %v2079_v56  ;;  %v2004_v44 = vld [vmem:[%s2587_s4 + $0x24] ss:$8 sps:$4 sm:$0xff]  }
 0x2b4   :  { %1837 = vmatmul.mubr.bf16.vlgmr.msra.gmra.mrb[20].mxu0 %v494_v34  ;;  %891 = vmatprep.subr.bf16.mxu1 %v1982_v45  ;;  %v2002_v45 = vld [vmem:[%s2587_s4 + $0x20] ss:$8 sps:$4 sm:$0xff]  }
 0x2b5   :  { %1861 = vmatpush3.bf16.msra.mxu0 %v1969_v33  ;;  %1876 = vmatprep.mubr.msk.bf16.mxu0 %vm2078_vm0, %v2077_v3 }
 0x2b6   :  { %1862 = vmatprep.subr.bf16.mxu0 %v2077_v3 }
 0x2b7   :  { %892 = vmatpush1.bf16.msra.mxu1 %v1980_v46  ;;  %v2007_v46 = vld [vmem:[%s2587_s4 + $0x34] ss:$8 sps:$4 sm:$0xff]  }
 0x2b8   :  { %893 = vmatprep.subr.bf16.mxu1 %v1985_v47  ;;  %v2005_v47 = vld [vmem:[%s2587_s4 + $0x30] ss:$8 sps:$4 sm:$0xff]  }
 0x2b9   :  { %1863 = vmatpush3.bf16.msra.mxu0 %v1970_v35  ;;  %v2026_v35 = vld [vmem:[%s2593_s10 + $0x48] sm:$0xff]  }
 0x2ba   :  { %1864 = vmatprep.subr.bf16.mxu0 %v2077_v3 }
 0x2bb   :  { %894 = vmatpush1.bf16.msra.mxu1 %v1983_v48  ;;  %v2010_v48 = vld [vmem:[%s2587_s4 + $0x44] ss:$8 sps:$4 sm:$0xff]  }
 0x2bc   :  { %895 = vmatprep.subr.bf16.mxu1 %v1989_v49  ;;  %v2008_v49 = vld [vmem:[%s2587_s4 + $0x40] ss:$8 sps:$4 sm:$0xff]  }
 0x2bd   :  { %1865 = vmatpush3.bf16.msra.mxu0 %v1971_v36 }
 0x2be   :  { %1866 = vmatprep.subr.bf16.mxu0 %v2077_v3 }
 0x2bf   :  { %896 = vmatpush1.bf16.msra.mxu1 %v1987_v50  ;;  %v2013_v50 = vld [vmem:[%s2587_s4 + $0x54] ss:$8 sps:$4 sm:$0xff]  }
 0x2c0   :  { %897 = vmatprep.subr.bf16.mxu1 %v1992_v51  ;;  %v2011_v51 = vld [vmem:[%s2587_s4 + $0x50] ss:$8 sps:$4 sm:$0xff]  }
 0x2c1   :  { %1867 = vmatpush3.bf16.msra.mxu0 %v1972_v37 }
 0x2c2   :  { %1868 = vmatprep.subr.bf16.mxu0 %v2077_v3 }
 0x2c3   :  { %898 = vmatpush1.bf16.msra.mxu1 %v1990_v52  ;;  %v2016_v52 = vld [vmem:[%s2587_s4 + $0x64] ss:$8 sps:$4 sm:$0xff]  }
 0x2c4   :  { %899 = vmatprep.subr.bf16.mxu1 %v1995_v53  ;;  %v2014_v53 = vld [vmem:[%s2587_s4 + $0x60] ss:$8 sps:$4 sm:$0xff]  }
 0x2c5   :  { %1869 = vmatpush3.bf16.msra.mxu0 %v1973_v38  ;;  %v1996_v38 = vld [vmem:[%s2587_s4] ss:$8 sps:$4 sm:$0xff]  }
 0x2c6   :  { %1870 = vmatprep.subr.bf16.mxu0 %v2077_v3 }
 0x2c7   :  { %900 = vmatpush1.bf16.msra.mxu1 %v1993_v54  ;;  %v2019_v54 = vld [vmem:[%s2587_s4 + $0x74] ss:$8 sps:$4 sm:$0xff]  }
 0x2c8   :  { %1017 = vmatprep.subr.bf16.mxu1 %v1998_v55  ;;  %v2017_v55 = vld [vmem:[%s2587_s4 + $0x70] ss:$8 sps:$4 sm:$0xff]  }
 0x2c9   :  { %1871 = vmatpush3.bf16.msra.mxu0 %v1974_v39 }
 0x2ca   :  { %1872 = vmatprep.subr.bf16.mxu0 %v2077_v3 }
 0x2cd   :  { %1873 = vmatpush3.bf16.msra.mxu0 %v1975_v40 }
 0x2ce   :  { %1874 = vmatprep.subr.bf16.mxu0 %v2077_v3 }
 0x2d1   :  { %1875 = vmatpush3.bf16.msra.mxu0 %v1976_v41  ;;  %v2001_v41 = vld [vmem:[%s2587_s4 + $0x14] ss:$8 sps:$4 sm:$0xff]  }
 0x2d2   :  { %1880 = vmatprep.subr.bf16.mxu0 %v2077_v3 }
 0x2d4   :  { %1877 = vmatmul.mubr.bf16.vlgmr.msra.gmra.mrb[24].mxu0 %v687_v42  ;;  %v2028_v42 = vld [vmem:[%s2593_s10 + $0x50] sm:$0xff]  }
 0x2d5   :  { %1882 = vmatprep.mubr.msk.bf16.mxu0 %vm2078_vm0, %v2077_v3 }
 0x385   :  { %v665_v57 = vpop.f32.mrb[8].mxu1 }
 0x386   :  { %v1858_v58 = vpop.f32.mrb[9].mxu1 }
 0x387   :  { %v577_v59 = vpop.f32.mrb[20].mxu0  ;;  %v668_v60 = vpop.f32.mrb[10].mxu1  ;;  %v935_v58 = vpack.c.b16 %v2292_v22, %v2292_v22  ;;  %v2027_v22 = vld [vmem:[%s2593_s10 + $0x18] sm:$0xff]  }
 0x388   :  { %v666_v61 = vadd.f32 %v665_v57, %v577_v59  ;;  %v1838_v62 = vpop.f32.mrb[21].mxu0  ;;  %v1859_v63 = vpop.f32.mrb[11].mxu1  ;;  %v2021_v57 = vld [vmem:[%s2593_s10] sm:$0xff]   ;;  %v2023_v59 = vld [vmem:[%s2593_s10 + $0x8] sm:$0xff]   ;;  %v2025_v60 = vld [vmem:[%s2593_s10 + $0x10] sm:$0xff]  }
 0x389   :  { %v580_v0 = vpop.f32.mrb[22].mxu0  ;;  %v2031_v62 = vld [vmem:[%s2593_s10 + $0x28] sm:$0xff]   ;;  %v2030_v63 = vld [vmem:[%s2593_s10 + $0x58] sm:$0xff]  }
 0x38a   :  { %v1839_v1 = vpop.f32.mrb[23].mxu0 }
 0x3a7   :  { %v770_v2 = vpop.f32.mrb[24].mxu0 }
 0x3a8   :  { %v776_v5 = vadd.f32 %v770_v2, %v666_v61  ;;  %v1878_v6 = vpop.f32.mrb[25].mxu0  ;;  %v2029_v61 = vld [vmem:[%s2593_s10 + $0x20] sm:$0xff]  }
 0x3a9   :  { %v773_v7 = vpop.f32.mrb[26].mxu0 }
 0x3aa   :  { %v784_v8 = vadd.f32 %v1632_v4, %v776_v5  ;;  %v1879_v9 = vpop.f32.mrb[27].mxu0  ;;  %v2032_v5 = vld [vmem:[%s2593_s10 + $0x60] sm:$0xff]  }
 0x3ab   :  { %v2034_v9 = vld [vmem:[%s2593_s10 + $0x70] sm:$0xff]  }
 0x3ac   :  { %v785_v10 = vmax.f32 %v784_v8, 0.0  ;;  %v2033_v8 = vld [vmem:[%s2593_s10 + $0x68] sm:$0xff]  }
 0x3ae   :  { %v787_v11 = vcombine.high %v785_v10, %v785_v10  ;;  %v790_v12 = vsel %vm789_vm5, %v785_v10, 0.0  ;;  %v1060_v13 = vpack.c.bf16 %v785_v10, %v785_v10 }
 0x3af   :  { %v791_v14 = vrot.slane %v790_v12, 4 }
 0x3b0   :  { %v797_v15 = vsel %vm789_vm5, %v787_v11, 0.0  ;;  %v1072_v16 = vsel %vm1070_vm6, %v1060_v13, 0  ;;  %v2036_v13 = vld [vmem:[%s2593_s10 + $0x80] sm:$0xff]  }
 0x3b1   :  { %v792_v18 = vadd.f32 %v791_v14, %v790_v12  ;;  %v798_v19 = vrot.slane %v797_v15, 4  ;;  %1881 = vmatpush3.bf16.msra.mxu0 %v1072_v16 }
 0x3b2   :  { %1886 = vmatprep.subr.bf16.mxu0 %v2077_v3 }
 0x3b3   :  { %v793_v21 = vrot.slane %v792_v18, 2  ;;  %v799_v23 = vadd.f32 %v798_v19, %v797_v15  ;;  %v2037_v15 = vld [vmem:[%s2593_s10 + $0x88] sm:$0xff]  }
 0x3b4   :  { %1883 = vmatmul.mubr.msk.bf16.vlgmr.msra.gmra.mrb[28].mxu0 %vm1066_vm7, %v1986_v17 }
 0x3b5   :  { %v794_v24 = vadd.f32 %v793_v21, %v792_v18  ;;  %v800_v25 = vrot.slane %v799_v23, 2  ;;  %1887 = vmatpush3.bf16.msra.mxu0 %v2020_v20  ;;  %1898 = vmatprep.mubr.msk.bf16.mxu0 %vm2078_vm0, %v2077_v3 }
 0x3b6   :  { %1888 = vmatprep.subr.bf16.mxu0 %v2077_v3 }
 0x3b7   :  { %v795_v27 = vrot.slane %v794_v24, 1  ;;  %v801_v28 = vadd.f32 %v800_v25, %v799_v23  ;;  %v2043_v25 = vld [vmem:[%s2595_s12 + $0x14] ss:$8 sps:$4 sm:$0xff]  }
 0x3b9   :  { %v796_v29 = vadd.f32 %v795_v27, %v794_v24  ;;  %v802_v30 = vrot.slane %v801_v28, 1  ;;  %1889 = vmatpush3.bf16.msra.mxu0 %v2022_v26  ;;  %v2040_v24 = vld [vmem:[%s2595_s12 + $0x4] ss:$8 sps:$4 sm:$0xff]   ;;  %v2041_v26 = vld [vmem:[%s2595_s12 + $0x10] ss:$8 sps:$4 sm:$0xff]  }
 0x3ba   :  { %1890 = vmatprep.subr.bf16.mxu0 %v2077_v3  ;;  %v2046_v27 = vld [vmem:[%s2595_s12 + $0x24] ss:$8 sps:$4 sm:$0xff]  }
 0x3bb   :  { %v803_v32 = vadd.f32 %v802_v30, %v801_v28  ;;  %v816_v33 = vpack.c.bf16 %v796_v29, %v796_v29  ;;  %v2044_v28 = vld [vmem:[%s2595_s12 + $0x20] ss:$8 sps:$4 sm:$0xff]   ;;  %v2049_v29 = vld [vmem:[%s2595_s12 + $0x34] ss:$8 sps:$4 sm:$0xff]   ;;  %v2047_v30 = vld [vmem:[%s2595_s12 + $0x30] ss:$8 sps:$4 sm:$0xff]  }
 0x3bd   :  { %v817_v34 = vpack.c.bf16 %v803_v32, %v803_v32  ;;  %1891 = vmatpush3.bf16.msra.mxu0 %v2024_v31  ;;  %v820_v36 = vunpack.c.l.b16 %v816_v33  ;;  %v2052_v31 = vld [vmem:[%s2595_s12 + $0x44] ss:$8 sps:$4 sm:$0xff]   ;;  %v2050_v32 = vld [vmem:[%s2595_s12 + $0x40] ss:$8 sps:$4 sm:$0xff]  }
 0x3be   :  { %1892 = vmatprep.subr.bf16.mxu0 %v2077_v3 }
 0x3bf   :  { %v821_v37 = vunpack.c.l.b16 %v817_v34 }
 0x3c1   :  { %v823_v39 = vsel %vm822_vm4, %v821_v37, %v820_v36  ;;  %1893 = vmatpush3.bf16.msra.mxu0 %v2026_v35 }
 0x3c2   :  { %v824_v40 = vpack.c.b16 %v823_v39, %v823_v39  ;;  %1894 = vmatprep.subr.bf16.mxu0 %v2077_v3 }
 0x3c4   :  { %1645 = vmatmul.mubr.msk.bf16.vlgmr.msra.gmra.mrb[12].mxu1 %vm885_vm8, %v824_v40 }
 0x3c5   :  { %1018 = vmatpush1.bf16.msra.mxu1 %v1996_v38  ;;  %1049 = vmatprep.mubr.bf16.mxu1 %v2079_v56 }
 0x3c6   :  { %1019 = vmatprep.subr.bf16.mxu1 %v2001_v41  ;;  %1895 = vmatpush3.bf16.msra.mxu0 %v2028_v42  ;;  %v2080_v42 = vmov 1983009808  }
 0x3c7   :  { %1896 = vmatprep.subr.bf16.mxu0 %v2077_v3 }
 0x3c9   :  { %1020 = vmatpush1.bf16.msra.mxu1 %v1999_v43  ;;  %v1404_v43 = vunpack.c.l.s4 %v2080_v42 }
 0x3ca   :  { %1021 = vmatprep.subr.bf16.mxu1 %v2004_v44  ;;  %1897 = vmatpush3.bf16.msra.mxu0 %v2030_v63  ;;  %v1406_v44 = vlaneseq }
 0x3cb   :  { %1918 = vmatprep.subr.bf16.mxu0 %v2077_v3 }
 0x3cd   :  { %1022 = vmatpush1.bf16.msra.mxu1 %v2002_v45  ;;  %v1405_v45 = vunpack.c.0.s8 %v1404_v43 }
 0x3ce   :  { %1023 = vmatprep.subr.bf16.mxu1 %v2007_v46  ;;  %v1407_v46 = vshrl.u32 %v1406_v44, 7 }
 0x3d1   :  { %1024 = vmatpush1.bf16.msra.mxu1 %v2005_v47 }
 0x3d2   :  { %1025 = vmatprep.subr.bf16.mxu1 %v2010_v48  ;;  %v1685_v48 = vld [vmem:[%s2594_s11] ss:$0 sm:$0xff] }
 0x3d5   :  { %1026 = vmatpush1.bf16.msra.mxu1 %v2008_v49 }
 0x3d6   :  { %1027 = vmatprep.subr.bf16.mxu1 %v2013_v50 }
 0x3d9   :  { %1028 = vmatpush1.bf16.msra.mxu1 %v2011_v51 }
 0x3da   :  { %1029 = vmatprep.subr.bf16.mxu1 %v2016_v52 }
 0x3dd   :  { %1030 = vmatpush1.bf16.msra.mxu1 %v2014_v53  ;;  %v1408_v53 = vsub.s32 %v1405_v45, %v1407_v46 }
 0x3de   :  { %1031 = vmatprep.subr.bf16.mxu1 %v2019_v54 }
 0x3e1   :  { %1032 = vmatpush1.bf16.msra.mxu1 %v2017_v55 }
 0x3e2   :  { %1902 = vmatprep.subr.bf16.mxu1 %v2077_v3 }
 0x3e4   :  { %1050 = vmatmul.mubr.bf16.vlgmr.msra.gmra.mrb[16].mxu1 %v935_v58 }
 0x3e5   :  { %1903 = vmatpush3.bf16.msra.mxu1 %v2021_v57  ;;  %1914 = vmatprep.mubr.msk.bf16.mxu1 %vm2078_vm0, %v2077_v3 }
 0x3e6   :  { %1904 = vmatprep.subr.bf16.mxu1 %v2077_v3 }
 0x3e9   :  { %1905 = vmatpush3.bf16.msra.mxu1 %v2023_v59 }
 0x3ea   :  { %1906 = vmatprep.subr.bf16.mxu1 %v2077_v3 }
 0x3ed   :  { %1907 = vmatpush3.bf16.msra.mxu1 %v2025_v60 }
 0x3ee   :  { %1908 = vmatprep.subr.bf16.mxu1 %v2077_v3 }
 0x3f1   :  { %1909 = vmatpush3.bf16.msra.mxu1 %v2027_v22 }
 0x3f2   :  { %1910 = vmatprep.subr.bf16.mxu1 %v2077_v3 }
 0x3f5   :  { %1911 = vmatpush3.bf16.msra.mxu1 %v2029_v61 }
 0x3f6   :  { %1912 = vmatprep.subr.bf16.mxu1 %v2077_v3 }
 0x3f9   :  { %1913 = vmatpush3.bf16.msra.mxu1 %v2031_v62 }
 0x3fa   :  { %1500 = vmatprep.subr.bf16.mxu1 %v2040_v24 }
 0x487   :  { %v1108_v0 = vpop.f32.mrb[28].mxu0 }
 0x488   :  { %v1127_v1 = vpack.c.bf16 %v1108_v0, %v1108_v0  ;;  %v1884_v2 = vpop.f32.mrb[29].mxu0 }
 0x489   :  { %v1111_v4 = vpop.f32.mrb[30].mxu0 }
 0x48a   :  { %v1141_v6 = vrot.slane %v1127_v1, 2  ;;  %v1885_v7 = vpop.f32.mrb[31].mxu0  ;;  %1915 = vmatmul.mubr.msk.bf16.vlgmr.msra.gmra.mrb[20].mxu1 %vm885_vm8, %v1127_v1  ;;  %v1312_v16 = vpack.c.bf16 %v1111_v4, %v1111_v4 }
 0x48b   :  { %1532 = vmatprep.mubr.bf16.mxu1 %v2079_v56  ;;  %v2035_v56 = vld [vmem:[%s2593_s10 + $0x78] sm:$0xff]  }
 0x48c   :  { %1899 = vmatmul.mubr.msk.bf16.vlgmr.msra.gmra.mrb[32].mxu0 %vm885_vm8, %v1141_v6 }
 0x48d   :  { %1919 = vmatpush3.bf16.msra.mxu0 %v2032_v5  ;;  %1930 = vmatprep.mubr.msk.bf16.mxu0 %vm2078_vm0, %v2077_v3 }
 0x48e   :  { %1920 = vmatprep.subr.bf16.mxu0 %v2077_v3 }
 0x491   :  { %1921 = vmatpush3.bf16.msra.mxu0 %v2033_v8 }
 0x492   :  { %1922 = vmatprep.subr.bf16.mxu0 %v2077_v3 }
 0x495   :  { %1923 = vmatpush3.bf16.msra.mxu0 %v2034_v9 }
 0x496   :  { %1924 = vmatprep.subr.bf16.mxu0 %v2077_v3 }
 0x497   :  { %v923_v10 = vpop.f32.mrb[12].mxu1 }
 0x498   :  { %v925_v11 = vpop.f32.mrb[13].mxu1 }
 0x499   :  { %1925 = vmatpush3.bf16.msra.mxu0 %v2035_v56  ;;  %v927_v12 = vpop.f32.mrb[14].mxu1 }
 0x49a   :  { %v928_v14 = vpop.f32.mrb[15].mxu1  ;;  %1926 = vmatprep.subr.bf16.mxu0 %v2077_v3 }
 0x49b   :  { %v1547_v14 = vsub.s32 0, %v1407_v46 }
 0x49d   :  { %1927 = vmatpush3.bf16.msra.mxu0 %v2036_v13 }
 0x49e   :  { %1928 = vmatprep.subr.bf16.mxu0 %v2077_v3  ;;  %v2038_v3 = vld [vmem:[%s2595_s12] ss:$8 sps:$4 sm:$0xff]  }
 0x49f   :  { %1501 = vmatpush1.bf16.msra.mxu1 %v2038_v3 }
 0x4a0   :  { %1502 = vmatprep.subr.bf16.mxu1 %v2043_v25 }
 0x4a1   :  { %1929 = vmatpush3.bf16.msra.mxu0 %v2037_v15  ;;  %v1543_v15 = vld [vmem:[%s2596_s13] sm:$0x3]  ;;  %s2053_s13 = scalar_lea.vmem %s1578_s15, 64 }
 0x4a2   :  { %p2054_p0 = scmp.ne.s32.totalorder %s1578_s15, %s2053_s13  ;;  %p2059_p2 = scmp.lt.s32.totalorder %s2053_s13, %s2053_s13 }
 0x4a3   :  { %1503 = vmatpush1.bf16.msra.mxu1 %v2041_v26 }
 0x4a4   :  { %1931 = vmatmul.mubr.msk.bf16.vlgmr.msra.gmra.mrb[36].mxu0 %vm885_vm8, %v1312_v16  ;;  %1504 = vmatprep.subr.bf16.mxu1 %v2046_v27  ;;  %v1551_v16 = vsub.s32 1, %v1407_v46  ;;  %p2060_p3 = por %p2059_p2, %p2058_p1 }
 0x4a6   :  { %p2061_p4 = pnand %p2060_p3, %p2054_p0 }
 0x4a7   :  { %1505 = vmatpush1.bf16.msra.mxu1 %v2044_v28 }
 0x4a8   :  { %1506 = vmatprep.subr.bf16.mxu1 %v2049_v29 }
 0x4ab   :  { %1507 = vmatpush1.bf16.msra.mxu1 %v2047_v30 }
 0x4ac   :  { %1508 = vmatprep.subr.bf16.mxu1 %v2052_v31 }
 0x4af   :  { %1509 = vmatpush1.bf16.msra.mxu1 %v2050_v32 }
 0x4b7   :  { %v1051_v17 = vpop.f32.mrb[16].mxu1 }
 0x4b8   :  { %v2528_v18 = vadd.f32 %v1051_v17, %v923_v10  ;;  %v1053_v19 = vpop.f32.mrb[17].mxu1  ;;  %v1548_v17 = vrot.slane %v1543_v15, %v1547_v14 }
 0x4b9   :  { %v2530_v20 = vadd.f32 %v1053_v19, %v925_v11  ;;  %v1055_v21 = vpop.f32.mrb[18].mxu1 }
 0x4ba   :  { %v1056_v23 = vpop.f32.mrb[19].mxu1  ;;  %v1552_v21 = vrot.slane %v1543_v15, %v1551_v16 }
 0x55d   :  { %v1294_v33 = vpop.f32.mrb[20].mxu1 }
 0x55e   :  { %v1916_v34 = vpop.f32.mrb[21].mxu1 }
 0x55f   :  { %v1215_v35 = vpop.f32.mrb[32].mxu0  ;;  %v1297_v36 = vpop.f32.mrb[22].mxu1 }
 0x560   :  { %v1295_v37 = vadd.f32 %v1294_v33, %v1215_v35  ;;  %v1900_v38 = vpop.f32.mrb[33].mxu0  ;;  %v1917_v39 = vpop.f32.mrb[23].mxu1 }
 0x561   :  { %v1218_v40 = vpop.f32.mrb[34].mxu0 }
 0x562   :  { %v1901_v41 = vpop.f32.mrb[35].mxu0 }
 0x577   :  { %v1386_v47 = vpop.f32.mrb[36].mxu0 }
 0x578   :  { %v1392_v49 = vadd.f32 %v1386_v47, %v1295_v37  ;;  %v1932_v50 = vpop.f32.mrb[37].mxu0 }
 0x579   :  { %v1389_v51 = vpop.f32.mrb[38].mxu0 }
 0x57a   :  { %v1400_v52 = vadd.f32 %v1685_v48, %v1392_v49  ;;  %v1933_v54 = vpop.f32.mrb[39].mxu0 }
 0x57c   :  { %v1401_v55 = vmax.f32 %v1400_v52, 0.0 }
 0x57e   :  { %v1409_v57 = vrot.slane %v1401_v55, %v1408_v53 }
 0x580   :  { %v1410_v58 = vcombine.high %v1409_v57, %v1409_v57  ;;  %v1414_v59 = vsel %vm1413_vm9, %v1409_v57, 0.0 }
 0x581   :  { %v1415_v60 = vrot.slane %v1414_v59, 4 }
 0x582   :  { %v1421_v22 = vsel %vm1413_vm9, %v1410_v58, 0.0 }
 0x583   :  { %v1416_v61 = vadd.f32 %v1415_v60, %v1414_v59  ;;  %v1422_v62 = vrot.slane %v1421_v22, 4 }
 0x585   :  { %v1417_v63 = vrot.slane %v1416_v61, 2  ;;  %v1423_v0 = vadd.f32 %v1422_v62, %v1421_v22 }
 0x587   :  { %v1418_v1 = vadd.f32 %v1417_v63, %v1416_v61  ;;  %v1424_v2 = vrot.slane %v1423_v0, 2 }
 0x589   :  { %v1419_v4 = vrot.slane %v1418_v1, 1  ;;  %v1425_v5 = vadd.f32 %v1424_v2, %v1423_v0 }
 0x58b   :  { %v1420_v6 = vadd.f32 %v1419_v4, %v1418_v1  ;;  %v1426_v7 = vrot.slane %v1425_v5, 1 }
 0x58d   :  { %v1427_v8 = vadd.f32 %v1426_v7, %v1425_v5  ;;  %v1438_v9 = vpack.c.bf16 %v1420_v6, %v1420_v6 }
 0x58f   :  { %v1439_v56 = vpack.c.bf16 %v1427_v8, %v1427_v8  ;;  %v1442_v10 = vunpack.c.l.b16 %v1438_v9 }
 0x591   :  { %v1443_v11 = vunpack.c.l.b16 %v1439_v56 }
 0x593   :  { %v1444_v12 = vsel %vm822_vm4, %v1443_v11, %v1442_v10 }
 0x594   :  { %v1445_v13 = vpack.c.b16 %v1444_v12, %v1444_v12 }
 0x596   :  { %1696 = vmatmul.mubr.msk.bf16.vlgmr.msra.gmra.mrb[24].mxu1 %vm1496_vm10, %v1445_v13 }
 0x669   :  { %v1534_v19 = vpop.f32.mrb[24].mxu1 }
 0x66a   :  { %v1541_v23 = vadd.f32 %v1534_v19, %v2528_v18  ;;  %v1536_v24 = vpop.f32.mrb[25].mxu1 }
 0x66b   :  { %v1542_v3 = vadd.f32 %v1536_v24, %v2530_v20  ;;  %v1538_v25 = vpop.f32.mrb[26].mxu1 }
 0x66c   :  { %v1555_v26 = vadd.f32 %v1548_v17, %v1541_v23  ;;  %v1539_v27 = vpop.f32.mrb[27].mxu1 }
 0x66d   :  { %v1556_v28 = vadd.f32 %v1552_v21, %v1542_v3 }
 0x66e   :  { %v1557_v29 = vmax.f32 %v1555_v26, 0.0 }
 0x66f   :  { %v1558_v30 = vmax.f32 %v1556_v28, 0.0 }
 0x671   :  { %v1561_v31 = vcombine.low %v1557_v29, %v1558_v30 }
 0x673   :  { %1697 = vst.sshfl [vmem:[#allocation2] sm:$0x33 pattern:$0x76325410] %v1561_v31 }
 0x674   :  { %2064 = shalt.err (!%p2061_p4)
}
 0x675   :  { %s2065_s17 = scalar_lea.hbm %s2597_s14, 64 }
 0x676   :  { %p2066_p5 = scmp.ne.s32.totalorder %s2597_s14, %s2065_s17  ;;  %p2069_p6 = scmp.lt.u32.totalorder %s2065_s17, %s2597_s14 }
 0x678   :  { %p2071_p7 = pnand %p2069_p6, %p2066_p5 }
 0x67a   :  { %2074 = shalt.err (!%p2071_p7)
}
 0x67b   :  { %1580 = dma.vmem_to_hbm [thread:$0]  %s1578_s15, 64, %s2597_s14, [#allocation3]  }
 0x67c   :  { %2075 = dma.done.wait [#allocation3], 64  }
 0x67d   :  { %2076 = vsyncadd [#allocation3], 4294967232 }
 0x67e   :  { %1584 = vsyncpa [#allocation3], 1 }

</bundles_post_ra>
